<compile_context>
chip_gen: v7x
topology: tpu7x:2x2x1
jax: 0.10.0
libtpu: 0.0.40
codegen_flags: <defaults>
</compile_context>

<pallas_src>
import functools

import jax
import jax.numpy as jnp
from jax.experimental import pallas as pl
from jax.experimental.pallas import tpu as pltpu

_LANE = 128


def _attention_kernel(x_ref, wqkv_ref, bqkv_ref, y_ref, attn_ref, *,
                      seq_len, n_features, padded_features, mxu_dtype):
    S, F, Fp = seq_len, n_features, padded_features
    x = x_ref[...]                               # (TB*S, F) slab covering TB batch elements
    TB = x.shape[0] // S

    # Optional bf16 MXU inputs (f32 accumulation is kept via preferred_element_type).
    mm = (lambda a: a.astype(mxu_dtype)) if mxu_dtype is not None else (lambda a: a)

    # Fused QKV projection: single MXU pass with a (F, 3*Fp) RHS.  Each projection's
    # columns are padded to a 128-lane multiple (Fp) and the Q columns carry 1/sqrt(F),
    # so the slices below are lane-tile aligned and no extra scaling is needed.
    qkv = jnp.dot(mm(x), mm(wqkv_ref[...]),
                  preferred_element_type=jnp.float32) + bqkv_ref[...]
    q = qkv[:, 0 * Fp:1 * Fp].reshape(TB, S, Fp)
    k = qkv[:, 1 * Fp:2 * Fp].reshape(TB, S, Fp)
    v = qkv[:, 2 * Fp:3 * Fp].reshape(TB, S, Fp)

    # Scores: contract the (padded) feature dim of q and k directly — zero padding
    # contributes zero, and no k^T is materialized (no XLU transpose / VMEM temp).
    s = jnp.einsum("bqf,bkf->bqk", mm(q), mm(k),
                   preferred_element_type=jnp.float32)            # (TB, S, S)

    # Numerically stable softmax in f32 on the VPU; the reciprocal runs on the EUP slot
    # (approx=True) and co-issues with the surrounding vector work for ~zero cost.
    s = s - jnp.max(s, axis=-1, keepdims=True)
    p = jnp.exp(s)
    p = p * pl.reciprocal(jnp.sum(p, axis=-1, keepdims=True), approx=True)

    # Attention-weighted values + residual (padded columns of v are zero -> ignored).
    y = jnp.einsum("bqk,bkf->bqf", mm(p), mm(v),
                   preferred_element_type=jnp.float32)            # (TB, S, Fp)
    y = y.reshape(TB * S, Fp)[:, :F] + x

    # NOTE: at production sizes (F, S multiples of 128) both stores are lane-dense; for
    # very large S (>~512) the S x S block should be flash-tiled over q rows to bound VMEM.
    y_ref[...] = y.astype(y_ref.dtype)
    attn_ref[...] = p.reshape(TB * S, S).astype(attn_ref.dtype)


def _step_vmem_bytes(tb, seq_len, n_features, padded_features):
    """Rough per-grid-step VMEM working set (f32), incl. double-buffered I/O blocks."""
    rows = tb * seq_len
    b = 4
    total = 2 * rows * n_features * b                     # x in (double-buffered)
    total += 2 * rows * n_features * b                    # y out
    total += 2 * rows * seq_len * b                       # attn out
    total += (n_features + 1) * 3 * padded_features * b   # weights + bias (single-buffered)
    total += rows * 3 * padded_features * b               # qkv intermediate
    total += 2 * tb * seq_len * seq_len * b               # scores + probs
    total += rows * padded_features * b                   # pv result
    return total


def _pick_batch_block(batch, seq_len, n_features, padded_features):
    """Batch elements per grid step.

    v5e/v6e have a single TensorCore, so the grid is a sequential loop: fewest steps wins.
    We only split when every resulting step still has >= 256 MXU rows (the regime where
    v7x's second TensorCore actually helps; the extra step is ~free on 1-TC chips too).
    """
    budget = 40 << 20   # headroom under v7x's 64 MiB physical VMEM

    def ok(d):
        if batch % d != 0:
            return False
        rows = d * seq_len
        if d != batch and rows % 8 != 0:          # block sublane-dim must be 8-aligned
            return False
        return _step_vmem_bytes(d, seq_len, n_features, padded_features) <= budget

    fitting = [d for d in range(1, batch + 1) if ok(d)] or [1]
    tb = max(fitting)                              # fewest sequential grid steps
    if tb == batch:
        fat = [d for d in fitting if batch // d >= 2 and d * seq_len >= 256]
        if fat:
            tb = max(fat)                          # 2+ fat steps -> v7x megacore gets work
    return tb


def model_attention_forward(x, wq, bq, wk, bk, wv, bv, *,
                            batch_block=None, mxu_dtype=None):
    """x: (B, S, F); w*: torch-style (F_out, F_in); b*: (F,). Returns (attn@v + x, attn).

    mxu_dtype=jnp.bfloat16 casts matmul *inputs* only (f32 accumulation, f32 softmax):
    2-4x MXU throughput on v6e/v7x at compute-bound sizes, ~1e-3 accuracy.
    """
    B, S, F = x.shape
    out_dtype = x.dtype

    # Pad each projection's output columns to a 128-lane multiple so the in-kernel q/k/v
    # column slices are tile-aligned; fold 1/sqrt(F) into the Q columns.
    Fp = ((F + _LANE - 1) // _LANE) * _LANE
    inv_scale = 1.0 / (F ** 0.5)
    pad_w = (lambda w: jnp.pad(w, ((0, 0), (0, Fp - F)))) if Fp != F else (lambda w: w)
    pad_b = (lambda v: jnp.pad(v, (0, Fp - F))) if Fp != F else (lambda v: v)
    w_qkv = jnp.concatenate(
        [pad_w(wq.T * inv_scale), pad_w(wk.T), pad_w(wv.T)], axis=1)          # (F, 3*Fp)
    b_qkv = jnp.concatenate(
        [pad_b(bq * inv_scale), pad_b(bk), pad_b(bv)]).reshape(1, 3 * Fp)     # (1, 3*Fp)

    if batch_block is not None:
        tb = int(batch_block)
        if B % tb != 0:
            raise ValueError(f"batch_block={tb} must divide batch={B}")
        if tb != B and (tb * S) % 8 != 0:
            raise ValueError(f"batch_block*seq_len={tb * S} must be a multiple of 8")
    else:
        tb = _pick_batch_block(B, S, F, Fp)

    rows = tb * S
    grid = (B // tb,)
    vmem_limit = int(min(max(_step_vmem_bytes(tb, S, F, Fp) * 5 // 4, 32 << 20), 64 << 20))

    # Present x / y / attn as 2-D sublane-dense slabs; boundary reshapes are free.
    x2 = x.reshape(B * S, F)

    kernel = functools.partial(_attention_kernel, seq_len=S, n_features=F,
                               padded_features=Fp, mxu_dtype=mxu_dtype)

    y2, attn2 = pl.pallas_call(
        kernel,
        grid=grid,
        in_specs=[
            pl.BlockSpec((rows, F), lambda i: (i, 0)),
            # Grid-invariant weight/bias: single-buffered so they are not duplicated.
            pl.BlockSpec((F, 3 * Fp), lambda i: (0, 0), pipeline_mode=pl.Buffered(1)),
            pl.BlockSpec((1, 3 * Fp), lambda i: (0, 0), pipeline_mode=pl.Buffered(1)),
        ],
        out_specs=[
            pl.BlockSpec((rows, F), lambda i: (i, 0)),
            pl.BlockSpec((rows, S), lambda i: (i, 0)),
        ],
        out_shape=[
            jax.ShapeDtypeStruct((B * S, F), out_dtype),
            jax.ShapeDtypeStruct((B * S, S), out_dtype),
        ],
        compiler_params=pltpu.CompilerParams(
            dimension_semantics=("parallel",),
            vmem_limit_bytes=vmem_limit),
    )(x2, w_qkv, b_qkv)

    return y2.reshape(B, S, F), attn2.reshape(B, S, S)


def _xavier_uniform(key, shape, dtype=jnp.float32):
    fan_out, fan_in = shape
    bound = (6.0 / (fan_in + fan_out)) ** 0.5
    return jax.random.uniform(key, shape, dtype=dtype, minval=-bound, maxval=bound)


if __name__ == "__main__":
    B, S, F = 2, 8, 32

    key = jax.random.PRNGKey(0)
    kx, kq, kk, kv = jax.random.split(key, 4)

    x = jax.random.normal(kx, (B, S, F), dtype=jnp.float32)

    # torch.nn.Linear(n_features, n_features): xavier_uniform_ weights, zero biases.
    wq = _xavier_uniform(kq, (F, F))
    wk = _xavier_uniform(kk, (F, F))
    wv = _xavier_uniform(kv, (F, F))
    bq = jnp.zeros((F,), jnp.float32)
    bk = jnp.zeros((F,), jnp.float32)
    bv = jnp.zeros((F,), jnp.float32)

    y, attn = model_attention_forward(x, wq, bq, wk, bk, wv, bv)
    jax.block_until_ready((y, attn))

    # Pure-JAX reference check (exact softmax; kernel uses the EUP approx reciprocal).
    def ref(x):
        q = x @ wq.T + bq
        k = x @ wk.T + bk
        v = x @ wv.T + bv
        s = jnp.einsum("bqd,bkd->bqk", q, k) / (F ** 0.5)
        p = jax.nn.softmax(s, axis=-1)
        return jnp.einsum("bqk,bkd->bqd", p, v) + x, p

    y_ref, attn_ref = ref(x)
    assert y.shape == (B, S, F) and attn.shape == (B, S, S)
    assert jnp.allclose(y, y_ref, atol=5e-3), "y mismatch"
    assert jnp.allclose(attn, attn_ref, atol=5e-3), "attn mismatch"

    print("KERNEL_OK")
</pallas_src>

<mosaic_0001>
module attributes {stable_mosaic.version = 11 : i64} {
  func.func @_attention_kernel(%arg0: i32, %arg1: memref<16x32xf32, #tpu.memory_space<vmem>>, %arg2: memref<32x384xf32, #tpu.memory_space<vmem>>, %arg3: memref<1x384xf32, #tpu.memory_space<vmem>>, %arg4: memref<16x32xf32, #tpu.memory_space<vmem>>, %arg5: memref<16x8xf32, #tpu.memory_space<vmem>>) attributes {dimension_semantics = [#tpu.dimension_semantics<parallel>], iteration_bounds = array<i64: 1>, scalar_prefetch = 0 : i64, scratch_operands = 0 : i64, tpu.core_type = #tpu.core_type<tc>, window_params = [{transform_indices = @transform_0, window_bounds = array<i64: 16, 32>}, {pipeline_mode = #tpu.pipeline_mode<synchronous>, transform_indices = @transform_1, window_bounds = array<i64: 32, 384>}, {pipeline_mode = #tpu.pipeline_mode<synchronous>, transform_indices = @transform_2, window_bounds = array<i64: 1, 384>}, {transform_indices = @transform_3, window_bounds = array<i64: 16, 32>}, {transform_indices = @transform_4, window_bounds = array<i64: 16, 8>}]} {
    %c0 = arith.constant 0 : index
    %c0_0 = arith.constant 0 : index
    %0 = vector.load %arg1[%c0, %c0_0] : memref<16x32xf32, #tpu.memory_space<vmem>>, vector<16x32xf32>
    %c0_1 = arith.constant 0 : index
    %c0_2 = arith.constant 0 : index
    %1 = vector.load %arg2[%c0_1, %c0_2] : memref<32x384xf32, #tpu.memory_space<vmem>>, vector<32x384xf32>
    %cst = arith.constant dense<0.000000e+00> : vector<16x384xf32>
    %2 = tpu.matmul %0, %1, %cst {dimension_numbers = #tpu.dot_dimension_numbers<[1], [0], [0], [1], [0, 0, 1, 1], [], []>} : vector<16x32xf32>, vector<32x384xf32>, vector<16x384xf32> -> vector<16x384xf32>
    %c0_3 = arith.constant 0 : index
    %c0_4 = arith.constant 0 : index
    %3 = vector.load %arg3[%c0_3, %c0_4] : memref<1x384xf32, #tpu.memory_space<vmem>>, vector<1x384xf32>
    %4 = vector.broadcast %3 : vector<1x384xf32> to vector<16x384xf32>
    %5 = arith.addf %2, %4 : vector<16x384xf32>
    %6 = vector.extract_strided_slice %5 {offsets = [0, 0], sizes = [16, 128], strides = [1, 1]} : vector<16x384xf32> to vector<16x128xf32>
    %7 = vector.shape_cast %6 : vector<16x128xf32> to vector<2x8x128xf32>
    %8 = vector.extract_strided_slice %5 {offsets = [0, 128], sizes = [16, 128], strides = [1, 1]} : vector<16x384xf32> to vector<16x128xf32>
    %9 = vector.shape_cast %8 : vector<16x128xf32> to vector<2x8x128xf32>
    %10 = vector.extract_strided_slice %5 {offsets = [0, 256], sizes = [16, 128], strides = [1, 1]} : vector<16x384xf32> to vector<16x128xf32>
    %11 = vector.shape_cast %10 : vector<16x128xf32> to vector<2x8x128xf32>
    "tpu.trace_start"() <{level = 10 : i32, message = "bqf,bkf->bqk"}> : () -> ()
    %cst_5 = arith.constant dense<0.000000e+00> : vector<2x8x8xf32>
    %12 = tpu.matmul %7, %9, %cst_5 {dimension_numbers = #tpu.dot_dimension_numbers<[2], [2], [1], [1], [0, 0, 0, 1, 1, 1], [0], [0]>} : vector<2x8x128xf32>, vector<2x8x128xf32>, vector<2x8x8xf32> -> vector<2x8x8xf32>
    "tpu.trace_stop"() : () -> ()
    %cst_6 = arith.constant dense<0xFF800000> : vector<2x8xf32>
    %13 = vector.multi_reduction <maximumf>, %12, %cst_6 [2] : vector<2x8x8xf32> to vector<2x8xf32>
    %14 = vector.shape_cast %13 : vector<2x8xf32> to vector<2x8x1xf32>
    %15 = vector.broadcast %14 : vector<2x8x1xf32> to vector<2x8x8xf32>
    %16 = arith.subf %12, %15 : vector<2x8x8xf32>
    %17 = math.exp %16 : vector<2x8x8xf32>
    %cst_7 = arith.constant dense<0.000000e+00> : vector<2x8xf32>
    %18 = vector.multi_reduction <add>, %17, %cst_7 [2] : vector<2x8x8xf32> to vector<2x8xf32>
    %19 = vector.shape_cast %18 : vector<2x8xf32> to vector<2x8x1xf32>
    %20 = tpu.reciprocal %19 {approx = true} : vector<2x8x1xf32> -> vector<2x8x1xf32>
    %21 = vector.broadcast %20 : vector<2x8x1xf32> to vector<2x8x8xf32>
    %22 = arith.mulf %17, %21 : vector<2x8x8xf32>
    "tpu.trace_start"() <{level = 10 : i32, message = "bqk,bkf->bqf"}> : () -> ()
    %cst_8 = arith.constant dense<0.000000e+00> : vector<2x8x128xf32>
    %23 = tpu.matmul %22, %11, %cst_8 {dimension_numbers = #tpu.dot_dimension_numbers<[2], [1], [1], [2], [0, 0, 0, 1, 1, 2], [0], [0]>} : vector<2x8x8xf32>, vector<2x8x128xf32>, vector<2x8x128xf32> -> vector<2x8x128xf32>
    "tpu.trace_stop"() : () -> ()
    %24 = vector.shape_cast %23 : vector<2x8x128xf32> to vector<16x128xf32>
    %25 = vector.extract_strided_slice %24 {offsets = [0, 0], sizes = [16, 32], strides = [1, 1]} : vector<16x128xf32> to vector<16x32xf32>
    %26 = arith.addf %25, %0 : vector<16x32xf32>
    %c0_9 = arith.constant 0 : index
    %c0_10 = arith.constant 0 : index
    %27 = vector.load %arg4[%c0_9, %c0_10] : memref<16x32xf32, #tpu.memory_space<vmem>>, vector<16x32xf32>
    tpu.vector_store %arg4[%c0_9, %c0_10], %26 {strides = array<i32>} : memref<16x32xf32, #tpu.memory_space<vmem>>, vector<16x32xf32>,
    %28 = vector.shape_cast %22 : vector<2x8x8xf32> to vector<16x8xf32>
    %c0_11 = arith.constant 0 : index
    %c0_12 = arith.constant 0 : index
    %29 = vector.load %arg5[%c0_11, %c0_12] : memref<16x8xf32, #tpu.memory_space<vmem>>, vector<16x8xf32>
    tpu.vector_store %arg5[%c0_11, %c0_12], %28 {strides = array<i32>} : memref<16x8xf32, #tpu.memory_space<vmem>>, vector<16x8xf32>,
    return
  }
  func.func @transform_0(%arg0: i32) -> (i32, i32) {
    %c0_i32 = arith.constant 0 : i32
    %c0_i32_0 = arith.constant 0 : i32
    return %arg0, %c0_i32 : i32, i32
  }
  func.func @transform_1(%arg0: i32) -> (i32, i32) {
    %c0_i32 = arith.constant 0 : i32
    %c0_i32_0 = arith.constant 0 : i32
    %c0_i32_1 = arith.constant 0 : i32
    return %c0_i32, %c0_i32_0 : i32, i32
  }
  func.func @transform_2(%arg0: i32) -> (i32, i32) {
    %c0_i32 = arith.constant 0 : i32
    %c0_i32_0 = arith.constant 0 : i32
    %c0_i32_1 = arith.constant 0 : i32
    return %c0_i32, %c0_i32_0 : i32, i32
  }
  func.func @transform_3(%arg0: i32) -> (i32, i32) {
    %c0_i32 = arith.constant 0 : i32
    %c0_i32_0 = arith.constant 0 : i32
    return %arg0, %c0_i32 : i32, i32
  }
  func.func @transform_4(%arg0: i32) -> (i32, i32) {
    %c0_i32 = arith.constant 0 : i32
    %c0_i32_0 = arith.constant 0 : i32
    return %arg0, %c0_i32 : i32, i32
  }
}

</mosaic_0001>

<bundles_post_ra>
// kernel: tpu_custom_call.1
= control target key start
LH: loop header
LB: loop body
LE: loop exit
PB: predicated region body
PF: predicated region fallthrough
CT: control target
= control target key end

     0   :  { %10 = vsyncpa [#allocation3], 0  ;;  %s851_s0 = inlined_call_operand.hbm [shape: f32[16,32], index: 0, kind: input, shape index: {}]   ;;  %s852_s1 = inlined_call_operand.hbm [shape: f32[32,384], index: 1, kind: input, shape index: {}]   ;;  %s853_s2 = inlined_call_operand.vmem [shape: f32[1,384], index: 2, kind: input, shape index: {}]   ;;  %s854_s3 = inlined_call_operand.hbm [shape: f32[16,32], index: 3, kind: output, shape index: {0}]   ;;  %s855_s4 = inlined_call_operand.vmem [shape: f32[16,8], index: 4, kind: output, shape index: {1}]  }
   0x1   :  { %11 = vsyncpa [#allocation6], 0 }
   0x2   :  { %12 = vsyncpa [#allocation4], 0  ;;  %s728_s15 = smov [#allocation2]   ;;  %s656_s19 = scalar_lea.hbm %s851_s0, 256 }
   0x3   :  { %s18_s16 = sshll.u32 %s728_s15, 4  ;;  %p657_p0 = scmp.ne.s32.totalorder %s851_s0, %s656_s19  ;;  %s19_s16 = int_to_ptr.vmem [resolvable:$true] %s18_s16 }
   0x4   :  { %p660_p1 = scmp.lt.u32.totalorder %s656_s19, %s851_s0 }
   0x6   :  { %p662_p2 = pnand %p660_p1, %p657_p0 }
   0x8   :  { %665 = shalt.err (!%p662_p2)
}
   0x9   :  { %s666_s24 = scalar_lea.vmem %s19_s16, 256  ;;  %p671_p4 = scmp.lt.s32.totalorder %s19_s16, %s19_s16 }
   0xa   :  { %p667_p3 = scmp.ne.s32.totalorder %s19_s16, %s666_s24  ;;  %p672_p5 = scmp.lt.s32.totalorder %s666_s24, %s666_s24 }
   0xc   :  { %p673_p6 = por %p672_p5, %p671_p4 }
   0xe   :  { %p674_p7 = pnand %p673_p6, %p667_p3 }
  0x10   :  { %677 = shalt.err (!%p674_p7)
}
  0x11   :  { %s729_s25 = smov 128   ;;  %s730_s26 = smov 8  }
  0x12   :  { %24 = dma.hbm_to_vmem [thread:$0]  %s851_s0, 256, %s19_s16, [#allocation3], %s729_s25, %s729_s25, %s730_s26  }
  0x13   :  { %s731_s29 = smov [#allocation5]   ;;  %s678_s7 = scalar_lea.hbm %s852_s1, 1536 }
  0x14   :  { %s30_s30 = sshll.u32 %s731_s29, 4  ;;  %p679_p8 = scmp.ne.s32.totalorder %s852_s1, %s678_s7  ;;  %s31_s30 = int_to_ptr.vmem [resolvable:$true] %s30_s30 }
  0x15   :  { %p682_p9 = scmp.lt.u32.totalorder %s678_s7, %s852_s1 }
  0x17   :  { %p684_p10 = pnand %p682_p9, %p679_p8 }
  0x19   :  { %687 = shalt.err (!%p684_p10)
}
  0x1a   :  { %s688_s12 = scalar_lea.vmem %s31_s30, 1536  ;;  %p693_p12 = scmp.lt.s32.totalorder %s31_s30, %s31_s30 }
  0x1b   :  { %p689_p11 = scmp.ne.s32.totalorder %s31_s30, %s688_s12  ;;  %p694_p13 = scmp.lt.s32.totalorder %s688_s12, %s688_s12 }
  0x1d   :  { %p695_p0 = por %p694_p13, %p693_p12 }
  0x1f   :  { %p696_p1 = pnand %p695_p0, %p689_p11 }
  0x21   :  { %699 = shalt.err (!%p696_p1)
}
  0x22   :  { %s732_s0 = smov 384   ;;  %s733_s13 = smov 24  }
  0x23   :  { %36 = dma.hbm_to_vmem [thread:$0]  %s852_s1, 1536, %s31_s30, [#allocation6], %s732_s0, %s732_s0, %s733_s13  }
  0x24   :  { %722 = dma.done.wait [#allocation3], 256  }
  0x25   :  { %723 = vsyncadd [#allocation3], 4294967040 }
  0x26   :  { %724 = dma.done.wait [#allocation6], 1536  }
  0x27   :  { %725 = vsyncadd [#allocation6], 4294965760  ;;  %v734_v0 = vmov 0.0   ;;  %v48_v1 = vld [vmem:[#allocation5 + $0x8] sm:$0xff]  ;;  %v51_v2 = vld [vmem:[#allocation5 + $0x20] sm:$0xff]  ;;  %vm76_vm0 = vcmask 261120   ;;  %v61_v21 = vlaneseq }
  0x28   :  { %147 = vmatprep.mubr.f32.mxu0 %v734_v0  ;;  %v47_v3 = vld [vmem:[#allocation5] sm:$0xff]  ;;  %v623_v4 = vpack.c.bf16 %v51_v2, %v48_v1  ;;  %v50_v5 = vld [vmem:[#allocation5 + $0x18] sm:$0xff]  ;;  %v57_v7 = vld [vmem:[#allocation5 + $0x50] sm:$0xff]  ;;  %vm735_vm1 = vmmov 0   ;;  %vm375_vm2 = vcmask 64512   ;;  %s736_s20 = smov [#allocation7]  }
  0x29   :  { %v54_v6 = vld [vmem:[#allocation5 + $0x38] sm:$0xff]  ;;  %v625_v8 = vpack.c.bf16 %v50_v5, %v47_v3  ;;  %v53_v10 = vld [vmem:[#allocation5 + $0x30] sm:$0xff]  ;;  %v56_v11 = vld [vmem:[#allocation5 + $0x48] sm:$0xff]  ;;  %v62_v22 = vshrl.u32 %v61_v21, 7  ;;  %s555_s21 = sshll.u32 %s736_s20, 4  ;;  %s556_s21 = int_to_ptr.vmem [resolvable:$true] %s555_s21 }
  0x2a   :  { %v627_v9 = vpack.c.bf16 %v57_v7, %v54_v6  ;;  %v790_v12 = vld [vmem:[#allocation2] sm:$0xff]  ;;  %624 = vmatprep.subr.bf16.mxu0 %v623_v4  ;;  %v52_v14 = vld [vmem:[#allocation5 + $0x28] sm:$0xff]  ;;  %v629_v15 = vpack.c.bf16 %v56_v11, %v53_v10  ;;  %v55_v17 = vld [vmem:[#allocation5 + $0x40] sm:$0xff]  ;;  %s700_s22 = scalar_lea.vmem %s556_s21, 256  ;;  %p705_p3 = scmp.lt.s32.totalorder %s556_s21, %s556_s21 }
  0x2b   :  { %v49_v13 = vld [vmem:[#allocation5 + $0x10] sm:$0xff]  ;;  %600 = vmatprep.mubr.msk.f32.mxu1 %vm76_vm0, %v790_v12  ;;  %626 = vmatpush1.bf16.msra.mxu0 %v625_v8  ;;  %v58_v18 = vld [vmem:[#allocation5 + $0x58] sm:$0xff]  ;;  %v67_v23 = vsub.s32 1, %v62_v22  ;;  %v63_v25 = vsub.s32 0, %v62_v22  ;;  %v71_v26 = vsub.s32 2, %v62_v22  ;;  %p701_p2 = scmp.ne.s32.totalorder %s556_s21, %s700_s22  ;;  %p706_p4 = scmp.lt.s32.totalorder %s700_s22, %s700_s22 }
  0x2c   :  { %v631_v16 = vpack.c.bf16 %v52_v14, %v49_v13  ;;  %628 = vmatprep.subr.bf16.mxu0 %v627_v9  ;;  %v635_v19 = vpack.c.bf16 %v58_v18, %v55_v17  ;;  %v798_v20 = vld [vmem:[#allocation2 + $0x8] sm:$0xff]  ;;  %v59_v24 = vld [vmem:[%s853_s2] sm:$0x7] }
  0x2d   :  { %v68_v27 = vrot.slane %v59_v24, %v67_v23  ;;  %v64_v29 = vrot.slane %v59_v24, %v63_v25  ;;  %v72_v31 = vrot.slane %v59_v24, %v71_v26  ;;  %p707_p5 = por %p706_p4, %p705_p3 }
  0x2e   :  { %632 = vmatprep.subr.bf16.mxu1 %v631_v16 }
  0x2f   :  { %634 = vmatpush3.bf16.msra.mxu1 %v631_v16  ;;  %630 = vmatpush1.bf16.msra.mxu0 %v629_v15  ;;  %p708_p6 = pnand %p707_p5, %p701_p2 }
  0x30   :  { %636 = vmatprep.subr.bf16.mxu1 %v635_v19  ;;  %608 = vmatprep.subr.mxu0 %v734_v0 }
  0x32   :  { %572 = vmatmul.mubr.msk.f32.vlgmr.msra.gmra.mrb[0].mxu0 %vm76_vm0, %v790_v12 }
  0x33   :  { %638 = vmatpush3.bf16.msra.mxu1 %v635_v19  ;;  %153 = vmatprep.mubr.f32.mxu0 %v734_v0 }
  0x34   :  { %603 = vmatprep.subr.mxu1 %v734_v0 }
  0x36   :  { %601 = vmatmul.mubr.msk.f32.vlgmr.msra.gmra.mrb[0].mxu1 %vm76_vm0, %v798_v20  ;;  %573 = vmatmul.mubr.msk.f32.gmra.mrb[2].mxu0 %vm76_vm0, %v798_v20 }
  0x37   :  { %605 = vmatprep.mubr.msk.f32.mxu1 %vm735_vm1, %v734_v0  ;;  %610 = vmatprep.mubr.msk.f32.mxu0 %vm735_vm1, %v734_v0 }
 0x105   :  { %v149_v28 = vpop.f32.mrb[0].mxu0 }
 0x106   :  { %v151_v30 = vpop.f32.mrb[1].mxu0  ;;  %v150_v36 = vadd.f32 %v149_v28, %v64_v29 }
 0x107   :  { %v152_v32 = vadd.f32 %v151_v30, %v68_v27 }
 0x109   :  { %v602_v33 = vpop.f32.mrb[0].mxu1  ;;  %v155_v34 = vpop.f32.mrb[2].mxu0  ;;  %604 = vmatpush3.xpose.msra.mxu1 %v152_v32 }
 0x10a   :  { %v226_v35 = vpop.f32.mrb[1].mxu1  ;;  %v157_v37 = vpop.f32.mrb[3].mxu0  ;;  %613 = vmatprep.subr.mxu1 %v734_v0  ;;  %v232_v40 = vadd.f32 %v602_v33, %v72_v31  ;;  %v156_v41 = vadd.f32 %v155_v34, %v64_v29 }
 0x10b   :  { %v227_v38 = vadd.f32 %v226_v35, %v72_v31  ;;  %v158_v39 = vadd.f32 %v157_v37, %v68_v27 }
 0x10c   :  { %606 = vmatmul.mubr.f32.vlgmr.msra.gmra.mrb[2].mxu1 %v150_v36 }
 0x10d   :  { %609 = vmatpush3.xpose.msra.mxu0 %v158_v39  ;;  %614 = vmatpush3.msra.mxu1 %v227_v38 }
 0x10e   :  { %618 = vmatprep.subr.mxu0 %v734_v0  ;;  %615 = vmatprep.mubr.msk.f32.mxu1 %vm735_vm1, %v734_v0 }
 0x110   :  { %611 = vmatmul.mubr.f32.vlgmr.msra.gmra.mrb[4].mxu0 %v156_v41 }
 0x111   :  { %619 = vmatpush3.msra.mxu0 %v232_v40  ;;  %620 = vmatprep.mubr.msk.f32.mxu0 %vm735_vm1, %v734_v0 }
 0x1df   :  { %v301_v42 = vpop.f32.mrb[2].mxu1 }
 0x1e0   :  { %v607_v43 = vpop.f32.mrb[3].mxu1  ;;  %v376_v44 = vsel %vm375_vm2, %v301_v42, -inf }
 0x1e1   :  { %377 = vmax.xlane.f32.xlu0 %v376_v44 }
 0x1e3   :  { %v371_v45 = vpop.f32.mrb[4].mxu0 }
 0x1e4   :  { %v612_v46 = vpop.f32.mrb[5].mxu0  ;;  %v379_v47 = vsel %vm375_vm2, %v371_v45, -inf }
 0x1e5   :  { %380 = vmax.xlane.f32.xlu0 %v379_v47 }
 0x26e   :  { %v378_v48 = vpop.xlane.xlu0 %377 }
 0x26f   :  { %v382_v49 = vsub.f32 %v301_v42, %v378_v48 }
 0x271   :  { %v384_v50 = vmul.f32 1.442695, %v382_v49 }
 0x272   :  { %v381_v51 = vpop.xlane.xlu0 %380 }
 0x273   :  { %648 = vpow2.f32 %v384_v50  ;;  %v383_v52 = vsub.f32 %v371_v45, %v381_v51 }
 0x275   :  { %v386_v53 = vmul.f32 1.442695, %v383_v52 }
 0x277   :  { %650 = vpow2.f32 %v386_v53 }
 0x27d   :  { %v649_v54 = vpop.eup %648 }
 0x27e   :  { %v388_v55 = vsel %vm375_vm2, %v649_v54, 0.0 }
 0x27f   :  { %389 = vadd.xlane.f32.xlu1 %v388_v55 }
 0x281   :  { %v651_v56 = vpop.eup %650 }
 0x282   :  { %v391_v57 = vsel %vm375_vm2, %v651_v56, 0.0 }
 0x283   :  { %392 = vadd.xlane.f32.xlu1 %v391_v57 }
 0x30c   :  { %v390_v58 = vpop.xlane.xlu1 %389 }
 0x30d   :  { %652 = vrcp.f32 %v390_v58 }
 0x310   :  { %v393_v59 = vpop.xlane.xlu1 %392 }
 0x311   :  { %654 = vrcp.f32 %v393_v59 }
 0x317   :  { %v653_v60 = vpop.eup %652 }
 0x318   :  { %v396_v61 = vmul.f32 %v653_v60, %v649_v54 }
 0x31a   :  { %548 = vst.msk [vmem:[%s855_s4] sm:$0xff] %vm375_vm2, %v396_v61  ;;  %616 = vmatmul.mubr.msk.f32.vlgmr.msra.gmra.mrb[4].mxu1 %vm375_vm2, %v396_v61 }
 0x31b   :  { %v655_v62 = vpop.eup %654 }
 0x31c   :  { %v397_v63 = vmul.f32 %v655_v62, %v651_v56 }
 0x31e   :  { %549 = vst.msk [vmem:[%s855_s4 + $0x8] sm:$0xff] %vm375_vm2, %v397_v63  ;;  %621 = vmatmul.mubr.msk.f32.vlgmr.msra.gmra.mrb[6].mxu0 %vm375_vm2, %v397_v63 }
 0x3ed   :  { %v467_v0 = vpop.f32.mrb[4].mxu1 }
 0x3ee   :  { %v544_v1 = vadd.f32 %v467_v0, %v790_v12  ;;  %v617_v2 = vpop.f32.mrb[5].mxu1 }
 0x3f0   :  { %546 = vst.msk [vmem:[#allocation7] sm:$0xff] %vm76_vm0, %v544_v1 }
 0x3f1   :  { %v540_v3 = vpop.f32.mrb[6].mxu0 }
 0x3f2   :  { %v545_v4 = vadd.f32 %v540_v3, %v798_v20  ;;  %v622_v5 = vpop.f32.mrb[7].mxu0 }
 0x3f4   :  { %547 = vst.msk [vmem:[#allocation7 + $0x8] sm:$0xff] %vm76_vm0, %v545_v4 }
 0x3f5   :  { %711 = shalt.err (!%p708_p6)
}
 0x3f6   :  { %s712_s24 = scalar_lea.hbm %s854_s3, 256 }
 0x3f7   :  { %p713_p7 = scmp.ne.s32.totalorder %s854_s3, %s712_s24  ;;  %p716_p8 = scmp.lt.u32.totalorder %s712_s24, %s854_s3 }
 0x3f9   :  { %p718_p9 = pnand %p716_p8, %p713_p7 }
 0x3fb   :  { %721 = shalt.err (!%p718_p9)
}
 0x3fc   :  { %561 = dma.vmem_to_hbm [thread:$0]  %s556_s21, 256, %s854_s3, [#allocation4], %s729_s25, %s729_s25, %s730_s26  }
 0x3fd   :  { %726 = dma.done.wait [#allocation4], 256  }
 0x3fe   :  { %727 = vsyncadd [#allocation4], 4294967040 }
 0x3ff   :  { %569 = vsyncpa [#allocation3], 1 }
 0x400   :  { %570 = vsyncpa [#allocation6], 1 }
 0x401   :  { %571 = vsyncpa [#allocation4], 1 }

</bundles_post_ra>
